<compile_context>
chip_gen: v6e
topology: v6e:2x2x1
jax: 0.10.0
libtpu: 0.0.40
codegen_flags: <defaults>
</compile_context>

<pallas_src>
import functools
import math

import jax
import jax.numpy as jnp
from jax import lax
from jax.experimental import pallas as pl
from jax.experimental.pallas import tpu as pltpu

ALPHA = 1e-05 * 1e-07      # module default alpha
LAMBDA = 100.0             # module default lambda_const

_LANES = 128


def _round_up(x, m):
    return (x + m - 1) // m * m


def _largest_divisor_leq(m, cap):
    cap = max(1, min(cap, m))
    for d in range(cap, 0, -1):
        if m % d == 0:
            return d
    return 1


def _rank_hinge_kernel(rp_rows_ref, rt_rows_ref, rp_col_ref, rt_col_ref,
                       out_ref, acc_ref, *, lambda_const, num_chunks,
                       lanes_per_chunk):
    """Grid step i: sum(hinge^2) over the (tile_i x n_pad) slab of the pairwise
    rank-loss matrix.  j is swept with an in-kernel loop over chunks of
    lanes_per_chunk*128 columns; each 128-lane strip accumulates vreg-wise into
    the (tile_i, 128) VMEM accumulator.  One XLU reduce per i-tile at the end."""
    tile_i = acc_ref.shape[0]

    # Hoist the lane-broadcast of this i-tile's rank columns out of the j loop.
    rp_i = jnp.broadcast_to(rp_col_ref[...], (tile_i, _LANES))   # (tile_i, 128)
    rt_i = jnp.broadcast_to(rt_col_ref[...], (tile_i, _LANES))

    acc_ref[...] = jnp.zeros_like(acc_ref)

    def chunk_body(jc, carry):
        rp_chunk = rp_rows_ref[pl.ds(jc, 1), :]                  # (1, tile_j)
        rt_chunk = rt_rows_ref[pl.ds(jc, 1), :]
        for lg in range(lanes_per_chunk):                        # unrolled strips
            s = lg * _LANES
            rp_j = rp_chunk[:, s:s + _LANES]                     # (1, 128) aligned
            rt_j = rt_chunk[:, s:s + _LANES]
            prod = (rp_i - rp_j) * (rt_i - rt_j)                 # rd * trd
            h = jnp.maximum(0.0, lambda_const - prod)            # hinge
            acc_ref[...] += h * h                                # vreg-wise accum
        return carry

    lax.fori_loop(0, num_chunks, chunk_body, 0, unroll=(num_chunks <= 2))

    # Single cross-lane/sublane reduce per i-tile; lane-dense (1,128) store.
    total = jnp.sum(acc_ref[...], axis=(0, 1), keepdims=True)    # (1, 1)
    out_ref[...] = jnp.broadcast_to(total, out_ref.shape)


def _pad_ranks(r, n_pad, gap):
    """Pad a rank vector so padded pairs contribute exactly 0 to the hinge sum
    except the (n_pad - n) pad-diagonal terms, which are exactly lambda^2 each
    (subtracted in the wrapper).  Pad ranks sit strictly above all real ranks
    with pairwise gaps >= gap, and gap^2 > lambda, so every off-diagonal pair
    involving a pad has rd*trd >= gap^2 > lambda -> hinge == 0."""
    n = r.shape[0]
    pad = n_pad - n
    if pad == 0:
        return r
    pad_vals = (n - 1) + gap * jnp.arange(1, pad + 1, dtype=jnp.float32)
    return jnp.concatenate([r, pad_vals])


def advanced_combine_loss(preds, targets, alpha=ALPHA, lambda_const=LAMBDA):
    """preds, targets: 1-D f32 vectors of identical length N (tie-free scores)."""
    n = preds.shape[0]
    preds = preds.astype(jnp.float32)
    targets = targets.astype(jnp.float32)

    # O(N) MSE handled by XLA in the wrapper (removed from the kernel).
    mse = jnp.mean((preds - targets) ** 2)

    # Ranks hoisted out of the kernel (O(N log N)); matches argsort(desc).argsort().
    rp = jnp.argsort(jnp.argsort(-preds)).astype(jnp.float32)
    rt = jnp.argsort(jnp.argsort(-targets)).astype(jnp.float32)

    n_pad = _round_up(n, _LANES)
    m = n_pad // _LANES
    pad = n_pad - n

    # i-tile: >= 4 blocks along the parallel axis when possible (v7x has 2 TCs),
    # capped at 256 rows to bound live vregs in the strip-mined hinge chain.
    gi = _largest_divisor_leq(m, max(1, min(2, m // 4)))
    tile_i = gi * _LANES
    num_i = n_pad // tile_i

    # j chunk swept in-kernel: up to 512 lanes per fori_loop step.
    gj = _largest_divisor_leq(m, 4)
    tile_j = gj * _LANES
    num_chunks = n_pad // tile_j

    gap = float(int(math.ceil(math.sqrt(lambda_const))) + 1)   # gap^2 > lambda
    rp_p = _pad_ranks(rp, n_pad, gap)
    rt_p = _pad_ranks(rt, n_pad, gap)

    rp_rows = rp_p.reshape(num_chunks, tile_j)   # j stream (resident, fetched once)
    rt_rows = rt_p.reshape(num_chunks, tile_j)
    rp_col = rp_p.reshape(n_pad, 1)              # i-tile columns
    rt_col = rt_p.reshape(n_pad, 1)

    kernel = functools.partial(_rank_hinge_kernel, lambda_const=lambda_const,
                               num_chunks=num_chunks, lanes_per_chunk=gj)

    rank_part = pl.pallas_call(
        kernel,
        grid=(num_i,),
        in_specs=[
            pl.BlockSpec((num_chunks, tile_j), lambda i: (0, 0)),  # rank_p rows (full)
            pl.BlockSpec((num_chunks, tile_j), lambda i: (0, 0)),  # rank_t rows (full)
            pl.BlockSpec((tile_i, 1), lambda i: (i, 0)),           # rank_p, i-slice col
            pl.BlockSpec((tile_i, 1), lambda i: (i, 0)),           # rank_t, i-slice col
        ],
        out_specs=pl.BlockSpec((1, _LANES), lambda i: (0, i)),     # per-i hinge^2 sum
        out_shape=jax.ShapeDtypeStruct((1, num_i * _LANES), jnp.float32),
        scratch_shapes=[pltpu.VMEM((tile_i, _LANES), jnp.float32)],
        compiler_params=pltpu.CompilerParams(
            dimension_semantics=("parallel",),
            vmem_limit_bytes=32 * 1024 * 1024,
        ),
        cost_estimate=pl.CostEstimate(
            flops=8 * n_pad * n_pad,
            transcendentals=0,
            bytes_accessed=4 * (2 * n_pad * 2 + 2 * n_pad + num_i * _LANES),
        ),
    )(rp_rows, rt_rows, rp_col, rt_col)

    # Tiny O(num_i) final combine in plain JAX.
    rank_sum = jnp.sum(rank_part.reshape(num_i, _LANES)[:, 0])
    # Remove the pad-diagonal hinge terms (each is exactly lambda^2).
    rank_sum = rank_sum - pad * (lambda_const ** 2)
    return mse + alpha * (rank_sum / (n * n) - lambda_const ** 2)


def _reference_loss(preds, targets, alpha=ALPHA, lambda_const=LAMBDA):
    """Pure-JAX reference mirroring the PyTorch module."""
    mse = jnp.mean((preds - targets) ** 2)
    pr = jnp.argsort(jnp.argsort(-preds)).astype(jnp.float32)
    tr = jnp.argsort(jnp.argsort(-targets)).astype(jnp.float32)
    rd = pr[:, None] - pr[None, :]
    trd = tr[:, None] - tr[None, :]
    rloss = jnp.maximum(0.0, -rd * trd + lambda_const) ** 2
    return mse + alpha * (jnp.mean(rloss) - lambda_const ** 2)


if __name__ == "__main__":
    # n=128 : single i-block, single chunk           (aligned, smallest path)
    # n=200 : padding path, num_i=2
    # n=640 : num_i=5, num_chunks=5 (rolled fori_loop, 128-lane chunks)
    # n=1024: tile_i=256, num_i=4, 512-lane chunks   (v7x-friendly split)
    for seed, n in ((0, 128), (1, 200), (2, 640), (3, 1024)):
        kp, kt = jax.random.split(jax.random.PRNGKey(seed))
        preds = jax.random.normal(kp, (n,), dtype=jnp.float32)
        targets = jax.random.normal(kt, (n,), dtype=jnp.float32)
        loss = jax.block_until_ready(advanced_combine_loss(preds, targets))
        ref = jax.block_until_ready(_reference_loss(preds, targets))
        assert jnp.allclose(loss, ref, rtol=1e-4, atol=1e-6), (n, loss, ref)
    print("KERNEL_OK")
</pallas_src>

<mosaic_0001>
module attributes {stable_mosaic.version = 11 : i64} {
  func.func @_rank_hinge_kernel(%arg0: i32, %arg1: memref<1x128xf32, #tpu.memory_space<vmem>>, %arg2: memref<1x128xf32, #tpu.memory_space<vmem>>, %arg3: memref<128x1xf32, #tpu.memory_space<vmem>>, %arg4: memref<128x1xf32, #tpu.memory_space<vmem>>, %arg5: memref<1x128xf32, #tpu.memory_space<vmem>>, %arg6: memref<128x128xf32, #tpu.memory_space<vmem>>) attributes {dimension_semantics = [#tpu.dimension_semantics<parallel>], iteration_bounds = array<i64: 1>, scalar_prefetch = 0 : i64, scratch_operands = 1 : i64, tpu.core_type = #tpu.core_type<tc>, window_params = [{pipeline_mode = #tpu.pipeline_mode<synchronous>, transform_indices = @transform_0, window_bounds = array<i64: 1, 128>}, {pipeline_mode = #tpu.pipeline_mode<synchronous>, transform_indices = @transform_1, window_bounds = array<i64: 1, 128>}, {transform_indices = @transform_2, window_bounds = array<i64: 128, 1>}, {transform_indices = @transform_3, window_bounds = array<i64: 128, 1>}, {transform_indices = @transform_4, window_bounds = array<i64: 1, 128>}]} {
    %c0 = arith.constant 0 : index
    %c0_0 = arith.constant 0 : index
    %0 = vector.load %arg3[%c0, %c0_0] : memref<128x1xf32, #tpu.memory_space<vmem>>, vector<128x1xf32>
    %1 = vector.shape_cast %0 : vector<128x1xf32> to vector<128x1xf32>
    %2 = vector.broadcast %1 : vector<128x1xf32> to vector<128x128xf32>
    %c0_1 = arith.constant 0 : index
    %c0_2 = arith.constant 0 : index
    %3 = vector.load %arg4[%c0_1, %c0_2] : memref<128x1xf32, #tpu.memory_space<vmem>>, vector<128x1xf32>
    %4 = vector.shape_cast %3 : vector<128x1xf32> to vector<128x1xf32>
    %5 = vector.broadcast %4 : vector<128x1xf32> to vector<128x128xf32>
    %cst = arith.constant 0.000000e+00 : f32
    %6 = vector.broadcast %cst : f32 to vector<128x128xf32>
    %c0_3 = arith.constant 0 : index
    %c0_4 = arith.constant 0 : index
    %7 = vector.load %arg6[%c0_3, %c0_4] : memref<128x128xf32, #tpu.memory_space<vmem>>, vector<128x128xf32>
    tpu.vector_store %arg6[%c0_3, %c0_4], %6 {strides = array<i32>} : memref<128x128xf32, #tpu.memory_space<vmem>>, vector<128x128xf32>,
    %c0_i32 = arith.constant 0 : i32
    %8 = arith.index_cast %c0_i32 : i32 to index
    %c0_5 = arith.constant 0 : index
    %9 = vector.load %arg1[%8, %c0_5] : memref<1x128xf32, #tpu.memory_space<vmem>>, vector<1x128xf32>
    %10 = arith.index_cast %c0_i32 : i32 to index
    %c0_6 = arith.constant 0 : index
    %11 = vector.load %arg2[%10, %c0_6] : memref<1x128xf32, #tpu.memory_space<vmem>>, vector<1x128xf32>
    %12 = vector.broadcast %9 : vector<1x128xf32> to vector<128x128xf32>
    %13 = arith.subf %2, %12 : vector<128x128xf32>
    %14 = vector.broadcast %11 : vector<1x128xf32> to vector<128x128xf32>
    %15 = arith.subf %5, %14 : vector<128x128xf32>
    %16 = arith.mulf %13, %15 : vector<128x128xf32>
    %cst_7 = arith.constant 1.000000e+02 : f32
    %17 = vector.broadcast %cst_7 : f32 to vector<128x128xf32>
    %18 = arith.subf %17, %16 : vector<128x128xf32>
    %cst_8 = arith.constant 0.000000e+00 : f32
    %19 = vector.broadcast %cst_8 : f32 to vector<128x128xf32>
    %20 = arith.maximumf %19, %18 : vector<128x128xf32>
    %c0_9 = arith.constant 0 : index
    %c0_10 = arith.constant 0 : index
    %21 = vector.load %arg6[%c0_9, %c0_10] : memref<128x128xf32, #tpu.memory_space<vmem>>, vector<128x128xf32>
    %22 = arith.mulf %20, %20 : vector<128x128xf32>
    %23 = arith.addf %21, %22 : vector<128x128xf32>
    %c0_11 = arith.constant 0 : index
    %c0_12 = arith.constant 0 : index
    %24 = vector.load %arg6[%c0_11, %c0_12] : memref<128x128xf32, #tpu.memory_space<vmem>>, vector<128x128xf32>
    tpu.vector_store %arg6[%c0_11, %c0_12], %23 {strides = array<i32>} : memref<128x128xf32, #tpu.memory_space<vmem>>, vector<128x128xf32>,
    %c1_i32 = arith.constant 1 : i32
    %c0_13 = arith.constant 0 : index
    %c0_14 = arith.constant 0 : index
    %25 = vector.load %arg6[%c0_13, %c0_14] : memref<128x128xf32, #tpu.memory_space<vmem>>, vector<128x128xf32>
    %26 = vector.shape_cast %25 : vector<128x128xf32> to vector<1x128x128xf32>
    %cst_15 = arith.constant dense<0.000000e+00> : vector<1xf32>
    %27 = vector.multi_reduction <add>, %26, %cst_15 [1, 2] : vector<1x128x128xf32> to vector<1xf32>
    %28 = vector.shape_cast %27 : vector<1xf32> to vector<1x1x1xf32>
    %29 = vector.extract %28[0, 0, 0] : f32 from vector<1x1x1xf32>
    %30 = vector.broadcast %29 : f32 to vector<1x1xf32>
    %31 = vector.shape_cast %30 : vector<1x1xf32> to vector<1x1xf32>
    %32 = vector.broadcast %31 : vector<1x1xf32> to vector<1x128xf32>
    %c0_16 = arith.constant 0 : index
    %c0_17 = arith.constant 0 : index
    %33 = vector.load %arg5[%c0_16, %c0_17] : memref<1x128xf32, #tpu.memory_space<vmem>>, vector<1x128xf32>
    tpu.vector_store %arg5[%c0_16, %c0_17], %32 {strides = array<i32>} : memref<1x128xf32, #tpu.memory_space<vmem>>, vector<1x128xf32>,
    return
  }
  func.func @transform_0(%arg0: i32) -> (i32, i32) {
    %c0_i32 = arith.constant 0 : i32
    %c0_i32_0 = arith.constant 0 : i32
    %c0_i32_1 = arith.constant 0 : i32
    return %c0_i32, %c0_i32_0 : i32, i32
  }
  func.func @transform_1(%arg0: i32) -> (i32, i32) {
    %c0_i32 = arith.constant 0 : i32
    %c0_i32_0 = arith.constant 0 : i32
    %c0_i32_1 = arith.constant 0 : i32
    return %c0_i32, %c0_i32_0 : i32, i32
  }
  func.func @transform_2(%arg0: i32) -> (i32, i32) {
    %c0_i32 = arith.constant 0 : i32
    %c0_i32_0 = arith.constant 0 : i32
    return %arg0, %c0_i32 : i32, i32
  }
  func.func @transform_3(%arg0: i32) -> (i32, i32) {
    %c0_i32 = arith.constant 0 : i32
    %c0_i32_0 = arith.constant 0 : i32
    return %arg0, %c0_i32 : i32, i32
  }
  func.func @transform_4(%arg0: i32) -> (i32, i32) {
    %c0_i32 = arith.constant 0 : i32
    %c0_i32_0 = arith.constant 0 : i32
    return %c0_i32, %arg0 : i32, i32
  }
}

</mosaic_0001>

<bundles_post_ra>
// kernel: tpu_custom_call.1
= control target key start
LH: loop header
LB: loop body
LE: loop exit
PB: predicated region body
PF: predicated region fallthrough
CT: control target
= control target key end

     0   :  { %v470_v2 = vmov 0   ;;  %s638_s0 = inlined_call_operand.vmem [shape: f32[1,128], index: 0, kind: input, shape index: {}]   ;;  %s639_s1 = inlined_call_operand.vmem [shape: f32[1,128], index: 1, kind: input, shape index: {}]   ;;  %s640_s2 = inlined_call_operand.vmem [shape: f32[128,1], index: 2, kind: input, shape index: {}]   ;;  %s641_s3 = inlined_call_operand.vmem [shape: f32[128,1], index: 3, kind: input, shape index: {}]   ;;  %s642_s4 = inlined_call_operand.hbm [shape: f32[1,128], index: 4, kind: output, shape index: {}]  }
   0x1   :  { %v114_v0 = vld [vmem:[%s641_s3] sm:$0xff]  ;;  %447 = vset.pattern.permute.xlu1 %v470_v2  ;;  %446 = vset.pattern.permute.xlu0 %v470_v2  ;;  %v115_v3 = vld [vmem:[%s641_s3 + $0x8] sm:$0xff]  ;;  %v116_v5 = vld [vmem:[%s641_s3 + $0x10] sm:$0xff] }
   0x2   :  { %v18_v1 = vld [vmem:[%s640_s2] sm:$0xff]  ;;  %132 = vperm.xlu1 %447, %v114_v0   ;;  %v19_v4 = vld [vmem:[%s640_s2 + $0x8] sm:$0xff]  ;;  %v20_v6 = vld [vmem:[%s640_s2 + $0x10] sm:$0xff] }
   0x3   :  { %36 = vperm.xlu0 %446, %v18_v1   ;;  %v117_v7 = vld [vmem:[%s641_s3 + $0x18] sm:$0xff] }
   0x4   :  { %v21_v8 = vld [vmem:[%s640_s2 + $0x18] sm:$0xff] }
   0x6   :  { %137 = vperm.xlu1 %447, %v115_v3  }
   0x7   :  { %41 = vperm.xlu0 %446, %v19_v4  }
   0xa   :  { %142 = vperm.xlu1 %447, %v116_v5  }
   0xb   :  { %46 = vperm.xlu0 %446, %v20_v6  }
   0xc   :  { %9 = vsyncpa [#allocation4], 0  ;;  %v118_v9 = vld [vmem:[%s641_s3 + $0x20] sm:$0xff]  ;;  %v119_v11 = vld [vmem:[%s641_s3 + $0x28] sm:$0xff] }
   0xd   :  { %v22_v10 = vld [vmem:[%s640_s2 + $0x20] sm:$0xff]  ;;  %v23_v12 = vld [vmem:[%s640_s2 + $0x28] sm:$0xff]  ;;  %v120_v13 = vld [vmem:[%s641_s3 + $0x30] sm:$0xff] }
   0xe   :  { %147 = vperm.xlu1 %447, %v117_v7   ;;  %v24_v14 = vld [vmem:[%s640_s2 + $0x30] sm:$0xff]  ;;  %v121_v15 = vld [vmem:[%s641_s3 + $0x38] sm:$0xff]  ;;  %v122_v17 = vld [vmem:[%s641_s3 + $0x40] sm:$0xff] }
   0xf   :  { %51 = vperm.xlu0 %446, %v21_v8   ;;  %v25_v16 = vld [vmem:[%s640_s2 + $0x38] sm:$0xff]  ;;  %v26_v18 = vld [vmem:[%s640_s2 + $0x40] sm:$0xff]  ;;  %v123_v19 = vld [vmem:[%s641_s3 + $0x48] sm:$0xff] }
  0x10   :  { %v27_v20 = vld [vmem:[%s640_s2 + $0x48] sm:$0xff]  ;;  %v124_v21 = vld [vmem:[%s641_s3 + $0x50] sm:$0xff]  ;;  %v125_v23 = vld [vmem:[%s641_s3 + $0x58] sm:$0xff] }
  0x11   :  { %v28_v22 = vld [vmem:[%s640_s2 + $0x50] sm:$0xff]  ;;  %v29_v24 = vld [vmem:[%s640_s2 + $0x58] sm:$0xff]  ;;  %v126_v25 = vld [vmem:[%s641_s3 + $0x60] sm:$0xff] }
  0x12   :  { %152 = vperm.xlu1 %447, %v118_v9   ;;  %v30_v26 = vld [vmem:[%s640_s2 + $0x60] sm:$0xff]  ;;  %v127_v27 = vld [vmem:[%s641_s3 + $0x68] sm:$0xff]  ;;  %v128_v29 = vld [vmem:[%s641_s3 + $0x70] sm:$0xff] }
  0x13   :  { %56 = vperm.xlu0 %446, %v22_v10   ;;  %v31_v28 = vld [vmem:[%s640_s2 + $0x68] sm:$0xff]  ;;  %v32_v30 = vld [vmem:[%s640_s2 + $0x70] sm:$0xff]  ;;  %v129_v31 = vld [vmem:[%s641_s3 + $0x78] sm:$0xff] }
  0x14   :  { %v33_v32 = vld [vmem:[%s640_s2 + $0x78] sm:$0xff]  ;;  %v596_v43 = vld [vmem:[%s639_s1] ss:$0 sm:$0xff] }
  0x15   :  { %v601_v44 = vld [vmem:[%s638_s0] ss:$0 sm:$0xff]  ;;  %s471_s0 = smov [#allocation3]  }
  0x16   :  { %157 = vperm.xlu1 %447, %v119_v11   ;;  %s432_s1 = sshll.u32 %s471_s0, 4  ;;  %s433_s1 = int_to_ptr.vmem [resolvable:$true] %s432_s1 }
  0x17   :  { %61 = vperm.xlu0 %446, %v23_v12   ;;  %s448_s30 = scalar_lea.vmem %s433_s1, 16  ;;  %s452_s5 = scalar_lea.vmem %s433_s1, 32 }
  0x18   :  { %p449_p0 = scmp.ne.s32.totalorder %s433_s1, %s448_s30  ;;  %p453_p1 = scmp.lt.s32.totalorder %s433_s1, %s433_s1 }
  0x19   :  { %p454_p2 = scmp.lt.s32.totalorder %s452_s5, %s448_s30 }
  0x1a   :  { %162 = vperm.xlu1 %447, %v120_v13  }
  0x1b   :  { %66 = vperm.xlu0 %446, %v24_v14   ;;  %p455_p3 = por %p454_p2, %p453_p1 }
  0x1d   :  { %p456_p4 = pnand %p455_p3, %p449_p0 }
  0x1e   :  { %167 = vperm.xlu1 %447, %v121_v15  }
  0x1f   :  { %71 = vperm.xlu0 %446, %v25_v16  }
  0x22   :  { %172 = vperm.xlu1 %447, %v122_v17  }
  0x23   :  { %76 = vperm.xlu0 %446, %v26_v18  }
  0x26   :  { %177 = vperm.xlu1 %447, %v123_v19  }
  0x27   :  { %81 = vperm.xlu0 %446, %v27_v20  }
  0x2a   :  { %182 = vperm.xlu1 %447, %v124_v21  }
  0x2b   :  { %86 = vperm.xlu0 %446, %v28_v22  }
  0x2e   :  { %187 = vperm.xlu1 %447, %v125_v23  }
  0x2f   :  { %91 = vperm.xlu0 %446, %v29_v24  }
  0x32   :  { %192 = vperm.xlu1 %447, %v126_v25  }
  0x33   :  { %96 = vperm.xlu0 %446, %v30_v26  }
  0x36   :  { %197 = vperm.xlu1 %447, %v127_v27  }
  0x37   :  { %101 = vperm.xlu0 %446, %v31_v28  }
  0x3a   :  { %202 = vperm.xlu1 %447, %v128_v29  }
  0x3b   :  { %106 = vperm.xlu0 %446, %v32_v30  }
  0x3e   :  { %207 = vperm.xlu1 %447, %v129_v31  }
  0x3f   :  { %111 = vperm.xlu0 %446, %v33_v32  }
  0x7d   :  { %v133_v33 = vpop.permute.xlu1 %132 }
  0x7e   :  { %v37_v34 = vpop.permute.xlu0 %36  ;;  %v256_v49 = vsub.f32 %v133_v33, %v596_v43 }
  0x7f   :  { %v234_v50 = vsub.f32 %v37_v34, %v601_v44 }
  0x81   :  { %v138_v35 = vpop.permute.xlu1 %137  ;;  %v272_v58 = vmul.f32 %v256_v49, %v234_v50 }
  0x82   :  { %v42_v36 = vpop.permute.xlu0 %41  ;;  %v257_v47 = vsub.f32 %v138_v35, %v596_v43 }
  0x83   :  { %v235_v48 = vsub.f32 %v42_v36, %v601_v44  ;;  %v288_v4 = vsub.f32 100.0, %v272_v58 }
  0x85   :  { %v143_v37 = vpop.permute.xlu1 %142  ;;  %v273_v55 = vmul.f32 %v257_v47, %v235_v48  ;;  %v304_v16 = vmax.f32 %v288_v4, 0.0 }
  0x86   :  { %v47_v38 = vpop.permute.xlu0 %46  ;;  %v258_v51 = vsub.f32 %v143_v37, %v596_v43 }
  0x87   :  { %v236_v52 = vsub.f32 %v47_v38, %v601_v44  ;;  %v289_v0 = vsub.f32 100.0, %v273_v55  ;;  %v336_v30 = vmul.f32 %v304_v16, %v304_v16 }
  0x89   :  { %v148_v39 = vpop.permute.xlu1 %147  ;;  %v274_v59 = vmul.f32 %v258_v51, %v236_v52  ;;  %v305_v11 = vmax.f32 %v289_v0, 0.0 }
  0x8a   :  { %v52_v40 = vpop.permute.xlu0 %51  ;;  %v259_v56 = vsub.f32 %v148_v39, %v596_v43 }
  0x8b   :  { %v237_v57 = vsub.f32 %v52_v40, %v601_v44  ;;  %v290_v5 = vsub.f32 100.0, %v274_v59  ;;  %v337_v24 = vmul.f32 %v305_v11, %v305_v11 }
  0x8d   :  { %v153_v41 = vpop.permute.xlu1 %152  ;;  %v275_v1 = vmul.f32 %v259_v56, %v237_v57  ;;  %v306_v17 = vmax.f32 %v290_v5, 0.0  ;;  %v400_v37 = vadd.f32 %v337_v24, %v336_v30 }
  0x8e   :  { %v57_v42 = vpop.permute.xlu0 %56  ;;  %v260_v60 = vsub.f32 %v153_v41, %v596_v43 }
  0x8f   :  { %v238_v61 = vsub.f32 %v57_v42, %v601_v44  ;;  %v291_v12 = vsub.f32 100.0, %v275_v1  ;;  %v338_v31 = vmul.f32 %v306_v17, %v306_v17 }
  0x91   :  { %v158_v45 = vpop.permute.xlu1 %157  ;;  %v276_v6 = vmul.f32 %v260_v60, %v238_v61  ;;  %v307_v25 = vmax.f32 %v291_v12, 0.0 }
  0x92   :  { %v62_v46 = vpop.permute.xlu0 %61  ;;  %v261_v2 = vsub.f32 %v158_v45, %v596_v43 }
  0x93   :  { %v239_v3 = vsub.f32 %v62_v46, %v601_v44  ;;  %v292_v18 = vsub.f32 100.0, %v276_v6  ;;  %v339_v40 = vmul.f32 %v307_v25, %v307_v25  ;;  %v401_v46 = vadd.f32 %v400_v37, %v338_v31 }
  0x95   :  { %v163_v53 = vpop.permute.xlu1 %162  ;;  %v277_v13 = vmul.f32 %v261_v2, %v239_v3  ;;  %v308_v32 = vmax.f32 %v292_v18, 0.0  ;;  %v402_v55 = vadd.f32 %v401_v46, %v339_v40 }
  0x96   :  { %v67_v54 = vpop.permute.xlu0 %66  ;;  %v262_v7 = vsub.f32 %v163_v53, %v596_v43 }
  0x97   :  { %v240_v8 = vsub.f32 %v67_v54, %v601_v44  ;;  %v293_v26 = vsub.f32 100.0, %v277_v13  ;;  %v340_v47 = vmul.f32 %v308_v32, %v308_v32 }
  0x99   :  { %v168_v62 = vpop.permute.xlu1 %167  ;;  %v278_v19 = vmul.f32 %v262_v7, %v240_v8  ;;  %v309_v41 = vmax.f32 %v293_v26, 0.0  ;;  %v403_v60 = vadd.f32 %v402_v55, %v340_v47 }
  0x9a   :  { %v72_v63 = vpop.permute.xlu0 %71  ;;  %v263_v14 = vsub.f32 %v168_v62, %v596_v43 }
  0x9b   :  { %v241_v15 = vsub.f32 %v72_v63, %v601_v44  ;;  %v294_v33 = vsub.f32 100.0, %v278_v19  ;;  %v341_v56 = vmul.f32 %v309_v41, %v309_v41 }
  0x9d   :  { %v173_v9 = vpop.permute.xlu1 %172  ;;  %v279_v27 = vmul.f32 %v263_v14, %v241_v15  ;;  %v310_v48 = vmax.f32 %v294_v33, 0.0  ;;  %v404_v4 = vadd.f32 %v403_v60, %v341_v56 }
  0x9e   :  { %v77_v10 = vpop.permute.xlu0 %76  ;;  %v264_v20 = vsub.f32 %v173_v9, %v596_v43 }
  0x9f   :  { %v242_v21 = vsub.f32 %v77_v10, %v601_v44  ;;  %v295_v42 = vsub.f32 100.0, %v279_v27  ;;  %v342_v61 = vmul.f32 %v310_v48, %v310_v48 }
  0xa1   :  { %v178_v22 = vpop.permute.xlu1 %177  ;;  %v280_v34 = vmul.f32 %v264_v20, %v242_v21  ;;  %v311_v57 = vmax.f32 %v295_v42, 0.0  ;;  %v405_v9 = vadd.f32 %v404_v4, %v342_v61 }
  0xa2   :  { %v82_v23 = vpop.permute.xlu0 %81  ;;  %v265_v28 = vsub.f32 %v178_v22, %v596_v43 }
  0xa3   :  { %v243_v29 = vsub.f32 %v82_v23, %v601_v44  ;;  %v296_v49 = vsub.f32 100.0, %v280_v34  ;;  %v343_v5 = vmul.f32 %v311_v57, %v311_v57 }
  0xa5   :  { %v183_v35 = vpop.permute.xlu1 %182  ;;  %v281_v45 = vmul.f32 %v265_v28, %v243_v29  ;;  %v312_v62 = vmax.f32 %v296_v49, 0.0  ;;  %v406_v17 = vadd.f32 %v405_v9, %v343_v5 }
  0xa6   :  { %v87_v36 = vpop.permute.xlu0 %86  ;;  %v266_v38 = vsub.f32 %v183_v35, %v596_v43 }
  0xa7   :  { %v244_v39 = vsub.f32 %v87_v36, %v601_v44  ;;  %v297_v58 = vsub.f32 100.0, %v281_v45  ;;  %v344_v10 = vmul.f32 %v312_v62, %v312_v62 }
  0xa9   :  { %v282_v50 = vmul.f32 %v266_v38, %v244_v39  ;;  %v188_v51 = vpop.permute.xlu1 %187  ;;  %v313_v6 = vmax.f32 %v297_v58, 0.0  ;;  %v407_v21 = vadd.f32 %v406_v17, %v344_v10 }
  0xaa   :  { %v92_v52 = vpop.permute.xlu0 %91  ;;  %v267_v53 = vsub.f32 %v188_v51, %v596_v43 }
  0xab   :  { %v245_v54 = vsub.f32 %v92_v52, %v601_v44  ;;  %v298_v63 = vsub.f32 100.0, %v282_v50  ;;  %v345_v18 = vmul.f32 %v313_v6, %v313_v6 }
  0xad   :  { %v283_v59 = vmul.f32 %v267_v53, %v245_v54  ;;  %v193_v0 = vpop.permute.xlu1 %192  ;;  %v314_v11 = vmax.f32 %v298_v63, 0.0  ;;  %v408_v29 = vadd.f32 %v407_v21, %v345_v18 }
  0xae   :  { %v97_v1 = vpop.permute.xlu0 %96  ;;  %v268_v2 = vsub.f32 %v193_v0, %v596_v43 }
  0xaf   :  { %v246_v3 = vsub.f32 %v97_v1, %v601_v44  ;;  %v299_v7 = vsub.f32 100.0, %v283_v59  ;;  %v346_v22 = vmul.f32 %v314_v11, %v314_v11 }
  0xb1   :  { %v284_v8 = vmul.f32 %v268_v2, %v246_v3  ;;  %v198_v12 = vpop.permute.xlu1 %197  ;;  %v315_v19 = vmax.f32 %v299_v7, 0.0  ;;  %v409_v33 = vadd.f32 %v408_v29, %v346_v22 }
  0xb2   :  { %v102_v13 = vpop.permute.xlu0 %101  ;;  %v269_v15 = vsub.f32 %v198_v12, %v596_v43 }
  0xb3   :  { %v300_v14 = vsub.f32 100.0, %v284_v8  ;;  %v247_v16 = vsub.f32 %v102_v13, %v601_v44  ;;  %v347_v30 = vmul.f32 %v315_v19, %v315_v19 }
  0xb5   :  { %v285_v20 = vmul.f32 %v269_v15, %v247_v16  ;;  %v203_v23 = vpop.permute.xlu1 %202  ;;  %v316_v25 = vmax.f32 %v300_v14, 0.0  ;;  %v410_v40 = vadd.f32 %v409_v33, %v347_v30 }
  0xb6   :  { %v107_v24 = vpop.permute.xlu0 %106  ;;  %v270_v27 = vsub.f32 %v203_v23, %v596_v43 }
  0xb7   :  { %v301_v26 = vsub.f32 100.0, %v285_v20  ;;  %v248_v28 = vsub.f32 %v107_v24, %v601_v44  ;;  %v348_v36 = vmul.f32 %v316_v25, %v316_v25 }
  0xb9   :  { %v317_v31 = vmax.f32 %v301_v26, 0.0  ;;  %v286_v32 = vmul.f32 %v270_v27, %v248_v28  ;;  %v208_v34 = vpop.permute.xlu1 %207  ;;  %v411_v46 = vadd.f32 %v410_v40, %v348_v36 }
  0xba   :  { %v112_v35 = vpop.permute.xlu0 %111  ;;  %v271_v38 = vsub.f32 %v208_v34, %v596_v43 }
  0xbb   :  { %v302_v37 = vsub.f32 100.0, %v286_v32  ;;  %v249_v39 = vsub.f32 %v112_v35, %v601_v44  ;;  %v349_v41 = vmul.f32 %v317_v31, %v317_v31 }
  0xbd   :  { %v318_v42 = vmax.f32 %v302_v37, 0.0  ;;  %v287_v45 = vmul.f32 %v271_v38, %v249_v39  ;;  %v412_v50 = vadd.f32 %v411_v46, %v349_v41 }
  0xbf   :  { %v350_v47 = vmul.f32 %v318_v42, %v318_v42  ;;  %v303_v48 = vsub.f32 100.0, %v287_v45 }
  0xc1   :  { %v319_v49 = vmax.f32 %v303_v48, 0.0  ;;  %v413_v52 = vadd.f32 %v412_v50, %v350_v47 }
  0xc3   :  { %v351_v51 = vmul.f32 %v319_v49, %v319_v49 }
  0xc5   :  { %v414_v53 = vadd.f32 %v413_v52, %v351_v51 }
  0xc7   :  { %415 = vadd.xlane.f32.xlu0 %v414_v53 }
 0x150   :  { %v416_v54 = vpop.xlane.xlu0 %415 }
 0x151   :  { %v417_v55 = vrot.slane %v416_v54, 4 }
 0x153   :  { %v418_v56 = vadd.f32 %v417_v55, %v416_v54 }
 0x155   :  { %v419_v57 = vrot.slane %v418_v56, 2 }
 0x157   :  { %v420_v43 = vadd.f32 %v419_v57, %v418_v56 }
 0x159   :  { %v421_v58 = vrot.slane %v420_v43, 1 }
 0x15b   :  { %v422_v44 = vadd.f32 %v421_v58, %v420_v43 }
 0x15d   :  { %442 = vpush %v422_v44 }
 0x18e   :  { %s443_s2 = spop %442 }
 0x18f   :  { %v424_v59 = vstv %s443_s2 }
 0x190   :  { %425 = vst [vmem:[#allocation3] sm:$0x1] %v424_v59 }
 0x191   :  { %459 = shalt.err (!%p456_p4)
}
 0x192   :  { %435 = dma.vmem_to_hbm [thread:$0]  %s433_s1, 16, %s642_s4, [#allocation4]  }
 0x193   :  { %468 = dma.done.wait [#allocation4], 16  }
 0x194   :  { %469 = vsyncadd [#allocation4], 4294967280 }
 0x195   :  { %439 = vsyncpa [#allocation4], 1 }

</bundles_post_ra>
